<compile_context>
chip_gen: v7x
topology: tpu7x:2x2x1
jax: 0.10.0
libtpu: 0.0.40
codegen_flags: <defaults>
</compile_context>

<pallas_src>
from functools import partial

import jax
import jax.numpy as jnp
from jax.experimental import pallas as pl
from jax.experimental.pallas import tpu as pltpu

NEG_SLOPE = 0.2      # GATConv default negative_slope
NEG_INF = -1e30
LANE = 128


def _round_up(v, m):
    return ((v + m - 1) // m) * m


# ---------------------------------------------------------------------------
# Fused Pallas kernel: conv1 + ReLU + conv2 + softmax(dim=0)
# ---------------------------------------------------------------------------
def _actor_fused_kernel(x_ref, w1_ref, asrc1_ref, b1_ref,
                        w2_ref, vsrc2_ref, b2_ref, mask_ref, out_ref,
                        *, heads1, f1, c_real):
    x = x_ref[...]                                   # (N, F_pad) f32
    mask = mask_ref[...].astype(jnp.float32)         # (N, N): 0 edge / -1e30
    b1 = b1_ref[...]                                 # (1, H*f1)

    # -------- layer 1: GATConv(in_channels, 16, heads=2) + ReLU ------------
    # one MXU matmul for both heads; the trailing H lanes are the folded
    # per-head dst scores (x @ (W1_h @ a_dst_h)) -- no XLU reduce needed.
    xp_all = jnp.dot(x, w1_ref[...],
                     preferred_element_type=jnp.float32)        # (N, H*f1 + H)
    # both heads' src scores in ONE MXU push, as lane-aligned rows (no
    # transpose): block-diagonal a_src (H, H*f1 + H) contracted over lanes.
    s_src_all = jax.lax.dot_general(asrc1_ref[...], xp_all,
                                    (((1,), (1,)), ((), ())),
                                    preferred_element_type=jnp.float32)  # (H, N)

    d0 = heads1 * f1
    head_outs = []
    for h in range(heads1):                          # static, tiny -> unrolled
        lo = h * f1
        xp = xp_all[:, lo:lo + f1]                   # (N, f1)
        s_dst = xp_all[:, d0 + h:d0 + h + 1]         # (N, 1) folded dst score
        s_src = s_src_all[h:h + 1, :]                # (1, N)

        # e[i, j] = LeakyReLU(a_dst.xp[i] + a_src.xp[j]) masked to edges j->i
        e = s_dst + s_src                            # (N, N)
        e = jnp.where(e > 0, e, NEG_SLOPE * e)
        e = e + mask

        # softmax over sources j for each target i
        m = jnp.max(e, axis=1, keepdims=True)
        p = jnp.exp(e - m)
        alpha = p * pl.reciprocal(jnp.sum(p, axis=1, keepdims=True),
                                  approx=True)       # (N, N)

        out_h = jnp.dot(alpha, xp, preferred_element_type=jnp.float32)   # (N, f1)
        head_outs.append(jnp.maximum(out_h + b1[:, lo:lo + f1], 0.0))    # fused ReLU

    # H*f1 = 32 <= 128: the concat stays inside one vreg, no VMEM round trip
    hcat = jnp.concatenate(head_outs, axis=1)        # (N, H*f1)

    # -------- layer 2: GATConv(32, out_channels, heads=1) ------------------
    xp2 = jnp.dot(hcat, w2_ref[...],
                  preferred_element_type=jnp.float32)           # (N, C_pad)
    s_dst2 = xp2[:, c_real:c_real + 1]               # (N, 1) folded dst column
    # src scores from the 32-wide hidden (a_src2 pre-folded through w2):
    # K=32, no padded dead lanes, lane-aligned (1, N) row.
    s_src2 = jax.lax.dot_general(vsrc2_ref[...], hcat,
                                 (((1,), (1,)), ((), ())),
                                 preferred_element_type=jnp.float32)     # (1, N)

    e2 = s_dst2 + s_src2
    e2 = jnp.where(e2 > 0, e2, NEG_SLOPE * e2)
    e2 = e2 + mask

    m2 = jnp.max(e2, axis=1, keepdims=True)
    p2 = jnp.exp(e2 - m2)
    alpha2 = p2 * pl.reciprocal(jnp.sum(p2, axis=1, keepdims=True), approx=True)

    y = jnp.dot(alpha2, xp2, preferred_element_type=jnp.float32) + b2_ref[...]

    # -------- softmax over dim=0 (across nodes, per feature column) --------
    mc = jnp.max(y, axis=0, keepdims=True)
    pc = jnp.exp(y - mc)
    # exact divide (tiny array) so real output columns sum to 1 at f32 accuracy
    out_ref[...] = pc / jnp.sum(pc, axis=0, keepdims=True)


# ---------------------------------------------------------------------------
# pallas_call wrapper: single gridless launch, everything resident in VMEM
# ---------------------------------------------------------------------------
def actor_fused(x, mask_bias, p, *, heads1, f1, c_real):
    n, _ = x.shape
    c_pad = p["w2f"].shape[1]
    vmem = pl.BlockSpec(memory_space=pltpu.MemorySpace.VMEM)
    kernel = partial(_actor_fused_kernel, heads1=heads1, f1=f1, c_real=c_real)
    return pl.pallas_call(
        kernel,
        out_shape=jax.ShapeDtypeStruct((n, c_pad), jnp.float32),
        in_specs=[vmem] * 8,
        out_specs=vmem,                              # lane-dense (C_pad % 128 == 0)
    )(x, p["w1f"], p["asrc1_blk"], p["b1"],
      p["w2f"], p["vsrc2"], p["b2"], mask_bias)


# ---------------------------------------------------------------------------
# One-time prep (hoisted off the per-call path): mask + folded/padded params
# ---------------------------------------------------------------------------
def build_mask_bias(edge_index, num_nodes):
    """Additive attention mask: 0 on edges (target,source) and self-loops
    (GATConv add_self_loops=True), -1e30 elsewhere. Built with one-hot
    matmuls (no XLA scatters) and shipped as bf16 (only O(N^2) operand)."""
    ids = jnp.arange(num_nodes)
    dst_oh = (ids[:, None] == edge_index[1][None, :]).astype(jnp.float32)  # (N, E)
    src_oh = (ids[:, None] == edge_index[0][None, :]).astype(jnp.float32)  # (N, E)
    adj = dst_oh @ src_oh.T + jnp.eye(num_nodes, dtype=jnp.float32)
    return jnp.where(adj > 0, 0.0, NEG_INF).astype(jnp.bfloat16)


def fold_params(params, in_channels, out_channels):
    """Pad lane dims and fold the attention vectors into the weight matmuls
    so dst/src scores fall out of the existing MXU pushes for free."""
    heads1, f1 = params["asrc1"].shape
    f_pad = _round_up(in_channels, LANE)
    c_pad = _round_up(out_channels + 1, LANE)   # +1 guarantees a spare dst lane

    w1, adst1, asrc1 = params["w1"], params["adst1"], params["asrc1"]
    # extra column h = W1_h @ a_dst_h  ->  xp_all[:, H*f1 + h] == dst score
    dst_cols = jnp.stack(
        [w1[:, h * f1:(h + 1) * f1] @ adst1[h] for h in range(heads1)], axis=1)
    w1f = jnp.concatenate([w1, dst_cols], axis=1)              # (F_in, H*f1 + H)
    w1f = jnp.pad(w1f, ((0, f_pad - in_channels), (0, 0)))

    # block-diagonal src vectors -> both heads' src scores in one dot_general
    asrc_blk = jax.scipy.linalg.block_diag(
        *[asrc1[h:h + 1] for h in range(heads1)])              # (H, H*f1)
    asrc_blk = jnp.concatenate(
        [asrc_blk, jnp.zeros((heads1, heads1), jnp.float32)], axis=1)

    w2, adst2, asrc2 = params["w2"], params["adst2"], params["asrc2"]
    d1 = heads1 * f1
    w2_dst = (w2 @ adst2[0])[:, None]                          # folded dst column
    w2f = jnp.concatenate(
        [w2, w2_dst,
         jnp.zeros((d1, c_pad - out_channels - 1), jnp.float32)], axis=1)
    vsrc2 = asrc2 @ w2.T                                       # (1, H*f1)
    b2 = jnp.pad(params["b2"], ((0, 0), (0, c_pad - out_channels)))

    return {"w1f": w1f, "asrc1_blk": asrc_blk, "b1": params["b1"],
            "w2f": w2f, "vsrc2": vsrc2, "b2": b2}


# ---------------------------------------------------------------------------
# Per-call forward (just pad x's lane dim and launch the fused kernel)
# ---------------------------------------------------------------------------
@partial(jax.jit, static_argnames=("out_channels",))
def actor_forward(folded, mask_bias, x, out_channels):
    n, f_in = x.shape
    f_pad = folded["w1f"].shape[0]
    heads1 = folded["asrc1_blk"].shape[0]
    f1 = folded["b1"].shape[1] // heads1
    x_pad = jnp.pad(x.astype(jnp.float32), ((0, 0), (0, f_pad - f_in)))
    out = actor_fused(x_pad, mask_bias, folded,
                      heads1=heads1, f1=f1, c_real=out_channels)
    return out[:, :out_channels]


def init_params(key, in_channels, out_channels):
    ks = jax.random.split(key, 8)

    def glorot(k, shape):
        lim = jnp.sqrt(6.0 / (shape[0] + shape[1]))
        return jax.random.uniform(k, shape, jnp.float32, -lim, lim)

    return {
        # conv1: GATConv(in_channels, 16, heads=2)
        "w1": glorot(ks[0], (in_channels, 2 * 16)),
        "asrc1": 0.1 * jax.random.normal(ks[1], (2, 16), jnp.float32),
        "adst1": 0.1 * jax.random.normal(ks[2], (2, 16), jnp.float32),
        "b1": jnp.zeros((1, 2 * 16), jnp.float32),
        # conv2: GATConv(32, out_channels, heads=1)
        "w2": glorot(ks[3], (2 * 16, out_channels)),
        "asrc2": 0.1 * jax.random.normal(ks[4], (1, out_channels), jnp.float32),
        "adst2": 0.1 * jax.random.normal(ks[5], (1, out_channels), jnp.float32),
        "b2": jnp.zeros((1, out_channels), jnp.float32),
    }


if __name__ == "__main__":
    in_channels, out_channels = 4, 4
    num_nodes = 8

    key = jax.random.PRNGKey(0)
    k_param, k_x = jax.random.split(key)

    params = init_params(k_param, in_channels, out_channels)

    # node features (N, in_channels)
    x = jax.random.normal(k_x, (num_nodes, in_channels), jnp.float32)

    # deterministic ring graph, both directions (no duplicate edges)
    src = jnp.concatenate([jnp.arange(num_nodes),
                           (jnp.arange(num_nodes) + 1) % num_nodes])
    dst = jnp.concatenate([(jnp.arange(num_nodes) + 1) % num_nodes,
                           jnp.arange(num_nodes)])
    edge_index = jnp.stack([src, dst]).astype(jnp.int32)  # (2, 16)

    # one-time prep (cache these as long as params / edge_index are static)
    folded = fold_params(params, in_channels, out_channels)
    mask_bias = build_mask_bias(edge_index, num_nodes)

    out = actor_forward(folded, mask_bias, x, out_channels)
    out = jax.block_until_ready(out)

    assert out.shape == (num_nodes, out_channels)
    # columns of softmax(dim=0) must each sum to 1
    col_sums = jnp.sum(out, axis=0)
    assert bool(jnp.all(jnp.abs(col_sums - 1.0) < 1e-4))

    print("KERNEL_OK")
</pallas_src>

<mosaic_0001>
module attributes {stable_mosaic.version = 11 : i64} {
  func.func @_actor_fused_kernel(%arg0: memref<8x128xf32, #tpu.memory_space<vmem>>, %arg1: memref<128x34xf32, #tpu.memory_space<vmem>>, %arg2: memref<2x34xf32, #tpu.memory_space<vmem>>, %arg3: memref<1x32xf32, #tpu.memory_space<vmem>>, %arg4: memref<32x128xf32, #tpu.memory_space<vmem>>, %arg5: memref<1x32xf32, #tpu.memory_space<vmem>>, %arg6: memref<1x128xf32, #tpu.memory_space<vmem>>, %arg7: memref<8x8xbf16, #tpu.memory_space<vmem>>, %arg8: memref<8x128xf32, #tpu.memory_space<vmem>>) attributes {dimension_semantics = [], scalar_prefetch = 0 : i64, scratch_operands = 0 : i64, tpu.core_type = #tpu.core_type<tc>} {
    %c0 = arith.constant 0 : index
    %c0_0 = arith.constant 0 : index
    %0 = vector.load %arg0[%c0, %c0_0] : memref<8x128xf32, #tpu.memory_space<vmem>>, vector<8x128xf32>
    %c0_1 = arith.constant 0 : index
    %c0_2 = arith.constant 0 : index
    %1 = vector.load %arg7[%c0_1, %c0_2] : memref<8x8xbf16, #tpu.memory_space<vmem>>, vector<8x8xbf16>
    %2 = arith.extf %1 : vector<8x8xbf16> to vector<8x8xf32>
    %c0_3 = arith.constant 0 : index
    %c0_4 = arith.constant 0 : index
    %3 = vector.load %arg3[%c0_3, %c0_4] : memref<1x32xf32, #tpu.memory_space<vmem>>, vector<1x32xf32>
    %c0_5 = arith.constant 0 : index
    %c0_6 = arith.constant 0 : index
    %4 = vector.load %arg1[%c0_5, %c0_6] : memref<128x34xf32, #tpu.memory_space<vmem>>, vector<128x34xf32>
    %cst = arith.constant dense<0.000000e+00> : vector<8x34xf32>
    %5 = tpu.matmul %0, %4, %cst {dimension_numbers = #tpu.dot_dimension_numbers<[1], [0], [0], [1], [0, 0, 1, 1], [], []>} : vector<8x128xf32>, vector<128x34xf32>, vector<8x34xf32> -> vector<8x34xf32>
    %c0_7 = arith.constant 0 : index
    %c0_8 = arith.constant 0 : index
    %6 = vector.load %arg2[%c0_7, %c0_8] : memref<2x34xf32, #tpu.memory_space<vmem>>, vector<2x34xf32>
    %cst_9 = arith.constant dense<0.000000e+00> : vector<2x8xf32>
    %7 = tpu.matmul %6, %5, %cst_9 {dimension_numbers = #tpu.dot_dimension_numbers<[1], [1], [0], [0], [0, 0, 1, 0], [], []>} : vector<2x34xf32>, vector<8x34xf32>, vector<2x8xf32> -> vector<2x8xf32>
    %8 = vector.extract_strided_slice %5 {offsets = [0, 0], sizes = [8, 16], strides = [1, 1]} : vector<8x34xf32> to vector<8x16xf32>
    %9 = vector.extract_strided_slice %5 {offsets = [0, 32], sizes = [8, 1], strides = [1, 1]} : vector<8x34xf32> to vector<8x1xf32>
    %10 = vector.extract_strided_slice %7 {offsets = [0, 0], sizes = [1, 8], strides = [1, 1]} : vector<2x8xf32> to vector<1x8xf32>
    %11 = vector.broadcast %9 : vector<8x1xf32> to vector<8x8xf32>
    %12 = vector.broadcast %10 : vector<1x8xf32> to vector<8x8xf32>
    %13 = arith.addf %11, %12 : vector<8x8xf32>
    %cst_10 = arith.constant 0.000000e+00 : f32
    %14 = vector.broadcast %cst_10 : f32 to vector<8x8xf32>
    %15 = arith.cmpf ogt, %13, %14 : vector<8x8xf32>
    %cst_11 = arith.constant 2.000000e-01 : f32
    %16 = vector.broadcast %cst_11 : f32 to vector<8x8xf32>
    %17 = arith.mulf %16, %13 : vector<8x8xf32>
    %18 = arith.select %15, %13, %17 : vector<8x8xi1>, vector<8x8xf32>
    %19 = arith.addf %18, %2 : vector<8x8xf32>
    %cst_12 = arith.constant dense<0xFF800000> : vector<8xf32>
    %20 = vector.multi_reduction <maximumf>, %19, %cst_12 [1] : vector<8x8xf32> to vector<8xf32>
    %21 = vector.shape_cast %20 : vector<8xf32> to vector<8x1xf32>
    %22 = vector.broadcast %21 : vector<8x1xf32> to vector<8x8xf32>
    %23 = arith.subf %19, %22 : vector<8x8xf32>
    %24 = math.exp %23 : vector<8x8xf32>
    %cst_13 = arith.constant dense<0.000000e+00> : vector<8xf32>
    %25 = vector.multi_reduction <add>, %24, %cst_13 [1] : vector<8x8xf32> to vector<8xf32>
    %26 = vector.shape_cast %25 : vector<8xf32> to vector<8x1xf32>
    %27 = tpu.reciprocal %26 {approx = true} : vector<8x1xf32> -> vector<8x1xf32>
    %28 = vector.broadcast %27 : vector<8x1xf32> to vector<8x8xf32>
    %29 = arith.mulf %24, %28 : vector<8x8xf32>
    %cst_14 = arith.constant dense<0.000000e+00> : vector<8x16xf32>
    %30 = tpu.matmul %29, %8, %cst_14 {dimension_numbers = #tpu.dot_dimension_numbers<[1], [0], [0], [1], [0, 0, 1, 1], [], []>} : vector<8x8xf32>, vector<8x16xf32>, vector<8x16xf32> -> vector<8x16xf32>
    %31 = vector.extract_strided_slice %3 {offsets = [0, 0], sizes = [1, 16], strides = [1, 1]} : vector<1x32xf32> to vector<1x16xf32>
    %32 = vector.broadcast %31 : vector<1x16xf32> to vector<8x16xf32>
    %33 = arith.addf %30, %32 : vector<8x16xf32>
    %cst_15 = arith.constant 0.000000e+00 : f32
    %34 = vector.broadcast %cst_15 : f32 to vector<8x16xf32>
    %35 = arith.maximumf %33, %34 : vector<8x16xf32>
    %36 = vector.extract_strided_slice %5 {offsets = [0, 16], sizes = [8, 16], strides = [1, 1]} : vector<8x34xf32> to vector<8x16xf32>
    %37 = vector.extract_strided_slice %5 {offsets = [0, 33], sizes = [8, 1], strides = [1, 1]} : vector<8x34xf32> to vector<8x1xf32>
    %38 = vector.extract_strided_slice %7 {offsets = [1, 0], sizes = [1, 8], strides = [1, 1]} : vector<2x8xf32> to vector<1x8xf32>
    %39 = vector.broadcast %37 : vector<8x1xf32> to vector<8x8xf32>
    %40 = vector.broadcast %38 : vector<1x8xf32> to vector<8x8xf32>
    %41 = arith.addf %39, %40 : vector<8x8xf32>
    %cst_16 = arith.constant 0.000000e+00 : f32
    %42 = vector.broadcast %cst_16 : f32 to vector<8x8xf32>
    %43 = arith.cmpf ogt, %41, %42 : vector<8x8xf32>
    %cst_17 = arith.constant 2.000000e-01 : f32
    %44 = vector.broadcast %cst_17 : f32 to vector<8x8xf32>
    %45 = arith.mulf %44, %41 : vector<8x8xf32>
    %46 = arith.select %43, %41, %45 : vector<8x8xi1>, vector<8x8xf32>
    %47 = arith.addf %46, %2 : vector<8x8xf32>
    %cst_18 = arith.constant dense<0xFF800000> : vector<8xf32>
    %48 = vector.multi_reduction <maximumf>, %47, %cst_18 [1] : vector<8x8xf32> to vector<8xf32>
    %49 = vector.shape_cast %48 : vector<8xf32> to vector<8x1xf32>
    %50 = vector.broadcast %49 : vector<8x1xf32> to vector<8x8xf32>
    %51 = arith.subf %47, %50 : vector<8x8xf32>
    %52 = math.exp %51 : vector<8x8xf32>
    %cst_19 = arith.constant dense<0.000000e+00> : vector<8xf32>
    %53 = vector.multi_reduction <add>, %52, %cst_19 [1] : vector<8x8xf32> to vector<8xf32>
    %54 = vector.shape_cast %53 : vector<8xf32> to vector<8x1xf32>
    %55 = tpu.reciprocal %54 {approx = true} : vector<8x1xf32> -> vector<8x1xf32>
    %56 = vector.broadcast %55 : vector<8x1xf32> to vector<8x8xf32>
    %57 = arith.mulf %52, %56 : vector<8x8xf32>
    %cst_20 = arith.constant dense<0.000000e+00> : vector<8x16xf32>
    %58 = tpu.matmul %57, %36, %cst_20 {dimension_numbers = #tpu.dot_dimension_numbers<[1], [0], [0], [1], [0, 0, 1, 1], [], []>} : vector<8x8xf32>, vector<8x16xf32>, vector<8x16xf32> -> vector<8x16xf32>
    %59 = vector.extract_strided_slice %3 {offsets = [0, 16], sizes = [1, 16], strides = [1, 1]} : vector<1x32xf32> to vector<1x16xf32>
    %60 = vector.broadcast %59 : vector<1x16xf32> to vector<8x16xf32>
    %61 = arith.addf %58, %60 : vector<8x16xf32>
    %cst_21 = arith.constant 0.000000e+00 : f32
    %62 = vector.broadcast %cst_21 : f32 to vector<8x16xf32>
    %63 = arith.maximumf %61, %62 : vector<8x16xf32>
    %64 = tpu.concatenate %35, %63 in 1 : vector<8x16xf32>, vector<8x16xf32> -> vector<8x32xf32>
    %c0_22 = arith.constant 0 : index
    %c0_23 = arith.constant 0 : index
    %65 = vector.load %arg4[%c0_22, %c0_23] : memref<32x128xf32, #tpu.memory_space<vmem>>, vector<32x128xf32>
    %cst_24 = arith.constant dense<0.000000e+00> : vector<8x128xf32>
    %66 = tpu.matmul %64, %65, %cst_24 {dimension_numbers = #tpu.dot_dimension_numbers<[1], [0], [0], [1], [0, 0, 1, 1], [], []>} : vector<8x32xf32>, vector<32x128xf32>, vector<8x128xf32> -> vector<8x128xf32>
    %67 = vector.extract_strided_slice %66 {offsets = [0, 4], sizes = [8, 1], strides = [1, 1]} : vector<8x128xf32> to vector<8x1xf32>
    %c0_25 = arith.constant 0 : index
    %c0_26 = arith.constant 0 : index
    %68 = vector.load %arg5[%c0_25, %c0_26] : memref<1x32xf32, #tpu.memory_space<vmem>>, vector<1x32xf32>
    %cst_27 = arith.constant dense<0.000000e+00> : vector<1x8xf32>
    %69 = tpu.matmul %68, %64, %cst_27 {dimension_numbers = #tpu.dot_dimension_numbers<[1], [1], [0], [0], [0, 0, 1, 0], [], []>} : vector<1x32xf32>, vector<8x32xf32>, vector<1x8xf32> -> vector<1x8xf32>
    %70 = vector.broadcast %67 : vector<8x1xf32> to vector<8x8xf32>
    %71 = vector.broadcast %69 : vector<1x8xf32> to vector<8x8xf32>
    %72 = arith.addf %70, %71 : vector<8x8xf32>
    %cst_28 = arith.constant 0.000000e+00 : f32
    %73 = vector.broadcast %cst_28 : f32 to vector<8x8xf32>
    %74 = arith.cmpf ogt, %72, %73 : vector<8x8xf32>
    %cst_29 = arith.constant 2.000000e-01 : f32
    %75 = vector.broadcast %cst_29 : f32 to vector<8x8xf32>
    %76 = arith.mulf %75, %72 : vector<8x8xf32>
    %77 = arith.select %74, %72, %76 : vector<8x8xi1>, vector<8x8xf32>
    %78 = arith.addf %77, %2 : vector<8x8xf32>
    %cst_30 = arith.constant dense<0xFF800000> : vector<8xf32>
    %79 = vector.multi_reduction <maximumf>, %78, %cst_30 [1] : vector<8x8xf32> to vector<8xf32>
    %80 = vector.shape_cast %79 : vector<8xf32> to vector<8x1xf32>
    %81 = vector.broadcast %80 : vector<8x1xf32> to vector<8x8xf32>
    %82 = arith.subf %78, %81 : vector<8x8xf32>
    %83 = math.exp %82 : vector<8x8xf32>
    %cst_31 = arith.constant dense<0.000000e+00> : vector<8xf32>
    %84 = vector.multi_reduction <add>, %83, %cst_31 [1] : vector<8x8xf32> to vector<8xf32>
    %85 = vector.shape_cast %84 : vector<8xf32> to vector<8x1xf32>
    %86 = tpu.reciprocal %85 {approx = true} : vector<8x1xf32> -> vector<8x1xf32>
    %87 = vector.broadcast %86 : vector<8x1xf32> to vector<8x8xf32>
    %88 = arith.mulf %83, %87 : vector<8x8xf32>
    %cst_32 = arith.constant dense<0.000000e+00> : vector<8x128xf32>
    %89 = tpu.matmul %88, %66, %cst_32 {dimension_numbers = #tpu.dot_dimension_numbers<[1], [0], [0], [1], [0, 0, 1, 1], [], []>} : vector<8x8xf32>, vector<8x128xf32>, vector<8x128xf32> -> vector<8x128xf32>
    %c0_33 = arith.constant 0 : index
    %c0_34 = arith.constant 0 : index
    %90 = vector.load %arg6[%c0_33, %c0_34] : memref<1x128xf32, #tpu.memory_space<vmem>>, vector<1x128xf32>
    %91 = vector.broadcast %90 : vector<1x128xf32> to vector<8x128xf32>
    %92 = arith.addf %89, %91 : vector<8x128xf32>
    %cst_35 = arith.constant dense<0xFF800000> : vector<128xf32>
    %93 = vector.multi_reduction <maximumf>, %92, %cst_35 [0] : vector<8x128xf32> to vector<128xf32>
    %94 = vector.shape_cast %93 : vector<128xf32> to vector<1x128xf32>
    %95 = vector.broadcast %94 : vector<1x128xf32> to vector<8x128xf32>
    %96 = arith.subf %92, %95 : vector<8x128xf32>
    %97 = math.exp %96 : vector<8x128xf32>
    %cst_36 = arith.constant dense<0.000000e+00> : vector<128xf32>
    %98 = vector.multi_reduction <add>, %97, %cst_36 [0] : vector<8x128xf32> to vector<128xf32>
    %99 = vector.shape_cast %98 : vector<128xf32> to vector<1x128xf32>
    %100 = vector.broadcast %99 : vector<1x128xf32> to vector<8x128xf32>
    %101 = arith.divf %97, %100 : vector<8x128xf32>
    %c0_37 = arith.constant 0 : index
    %c0_38 = arith.constant 0 : index
    %102 = vector.load %arg8[%c0_37, %c0_38] : memref<8x128xf32, #tpu.memory_space<vmem>>, vector<8x128xf32>
    tpu.vector_store %arg8[%c0_37, %c0_38], %101 {strides = array<i32>} : memref<8x128xf32, #tpu.memory_space<vmem>>, vector<8x128xf32>,
    return
  }
}

</mosaic_0001>

<bundles_post_ra>
// kernel: actor_forward.1
= control target key start
LH: loop header
LB: loop body
LE: loop exit
PB: predicated region body
PF: predicated region fallthrough
CT: control target
= control target key end

     0   :  { %v862_v0 = vmov 0.0|0.0   ;;  %vm863_vm0 = vmmov 0   ;;  %v864_v4 = vmov 0.0   ;;  %v865_v7 = vmov 32   ;;  %s869_s27 = smov 16   ;;  %s1047_s1 = inlined_call_operand.vmem [shape: f32[128,34], index: 1, kind: input, shape index: {}]   ;;  %s1048_s0 = inlined_call_operand.vmem [shape: f32[8,128], index: 0, kind: input, shape index: {}]   ;;  %s1049_s2 = inlined_call_operand.vmem [shape: f32[2,34], index: 2, kind: input, shape index: {}]   ;;  %s1050_s7 = inlined_call_operand.vmem [shape: bf16[8,8], index: 7, kind: input, shape index: {}]   ;;  %s1051_s3 = inlined_call_operand.vmem [shape: f32[1,32], index: 3, kind: input, shape index: {}]   ;;  %s1052_s4 = inlined_call_operand.vmem [shape: f32[32,128], index: 4, kind: input, shape index: {}]   ;;  %s1053_s5 = inlined_call_operand.vmem [shape: f32[1,32], index: 5, kind: input, shape index: {}]   ;;  %s1054_s6 = inlined_call_operand.vmem [shape: f32[1,128], index: 6, kind: input, shape index: {}]   ;;  %s1055_s8 = inlined_call_operand.vmem [shape: f32[8,128], index: 8, kind: output, shape index: {}]  }
   0x1   :  { %804 = vmatprep.subr.bf16.mxu0 %v862_v0  ;;  %v33_v1 = vld [vmem:[%s1047_s1] sm:$0xff]  ;;  %v34_v2 = vld [vmem:[%s1047_s1 + $0x8] sm:$0xff]  ;;  %v35_v3 = vld [vmem:[%s1047_s1 + $0x10] sm:$0xff]  ;;  %765 = vmatprep.mubr.msk.f32.mxu0 %vm863_vm0, %v864_v4  ;;  %vm120_vm1 = vcmask 277504   ;;  %v866_v31 = vmov 33   ;;  %v201_v32 = vlaneseq  ;;  %vm210_vm4 = vcmask 64512  }
   0x2   :  { %v805_v5 = vpack.c.bf16 %v34_v2, %v33_v1  ;;  %v36_v6 = vld [vmem:[%s1047_s1 + $0x18] sm:$0xff]  ;;  %842 = vset.pattern.permute.xlu0 %v865_v7  ;;  %768 = vmatprep.subr.mxu1 %v864_v4  ;;  %v37_v9 = vld [vmem:[%s1047_s1 + $0x20] sm:$0xff]  ;;  %v38_v10 = vld [vmem:[%s1047_s1 + $0x28] sm:$0xff]  ;;  %vm410_vm5 = vcmask 130048   ;;  %vm416_vm6 = vcmask 261120  }
   0x3   :  { %770 = vmatprep.mubr.msk.f32.mxu1 %vm863_vm0, %v864_v4  ;;  %v808_v8 = vpack.c.bf16 %v36_v6, %v35_v3  ;;  %v811_v11 = vpack.c.bf16 %v38_v10, %v37_v9  ;;  %v39_v12 = vld [vmem:[%s1047_s1 + $0x30] sm:$0xff]  ;;  %v40_v13 = vld [vmem:[%s1047_s1 + $0x38] sm:$0xff]  ;;  %v41_v15 = vld [vmem:[%s1047_s1 + $0x40] sm:$0xff]  ;;  %v986_v33 = vshrl.u32 %v201_v32, 7 }
   0x4   :  { %806 = vmatpush3.bf16.msra.mxu0 %v805_v5  ;;  %v814_v14 = vpack.c.bf16 %v40_v13, %v39_v12  ;;  %v42_v16 = vld [vmem:[%s1047_s1 + $0x48] sm:$0xff]  ;;  %v43_v18 = vld [vmem:[%s1047_s1 + $0x50] sm:$0xff]  ;;  %v44_v19 = vld [vmem:[%s1047_s1 + $0x58] sm:$0xff] }
   0x5   :  { %807 = vmatprep.subr.bf16.mxu0 %v862_v0  ;;  %v817_v17 = vpack.c.bf16 %v42_v16, %v41_v15  ;;  %v820_v20 = vpack.c.bf16 %v44_v19, %v43_v18  ;;  %v45_v21 = vld [vmem:[%s1047_s1 + $0x60] sm:$0xff]  ;;  %v46_v22 = vld [vmem:[%s1047_s1 + $0x68] sm:$0xff]  ;;  %v47_v24 = vld [vmem:[%s1047_s1 + $0x70] sm:$0xff]  ;;  %v203_v35 = vsub.s32 0, %v986_v33  ;;  %v308_v36 = vsub.s32 1, %v986_v33 }
   0x6   :  { %v823_v23 = vpack.c.bf16 %v46_v22, %v45_v21  ;;  %v48_v25 = vld [vmem:[%s1047_s1 + $0x78] sm:$0xff]  ;;  %v29_v27 = vld [vmem:[%s1048_s0] sm:$0xff]  ;;  %v414_v12 = vld [vmem:[%s1052_s4 + $0x10] sm:$0xff]  ;;  %v868_v19 = vmov 4  }
   0x7   :  { %v826_v26 = vpack.c.bf16 %v48_v25, %v47_v24  ;;  %v119_v30 = vld [vmem:[%s1049_s2] sm:$0x3]  ;;  %s867_s2 = smov 112   ;;  %844 = vset.pattern.permute.xlu1 %v868_v19 }
   0x8   :  { %809 = vmatpush3.bf16.msra.mxu0 %v808_v8  ;;  %v30_v41 = vld [vmem:[%s1050_s7] sm:$0xf] }
   0x9   :  { %810 = vmatprep.subr.bf16.mxu0 %v862_v0  ;;  %v995_v45 = vunpack.c.l.bf16 %v30_v41  ;;  %v693_v1 = vld [vmem:[%s1051_s3] ss:$0 sm:$0xff] }
   0xa   :  { %v412_v10 = vld [vmem:[%s1052_s4] sm:$0xff] }
   0xc   :  { %812 = vmatpush3.bf16.msra.mxu0 %v811_v11  ;;  %v413_v11 = vld [vmem:[%s1052_s4 + $0x8] sm:$0xff] }
   0xd   :  { %813 = vmatprep.subr.bf16.mxu0 %v862_v0  ;;  %v829_v13 = vpack.c.bf16 %v413_v11, %v412_v10 }
  0x10   :  { %815 = vmatpush3.bf16.msra.mxu0 %v814_v14  ;;  %v415_v14 = vld [vmem:[%s1052_s4 + $0x18] sm:$0xff] }
  0x11   :  { %816 = vmatprep.subr.bf16.mxu0 %v862_v0  ;;  %v832_v15 = vpack.c.bf16 %v415_v14, %v414_v12 }
  0x14   :  { %818 = vmatpush3.bf16.msra.mxu0 %v817_v17 }
  0x15   :  { %819 = vmatprep.subr.bf16.mxu0 %v862_v0 }
  0x18   :  { %821 = vmatpush3.bf16.msra.mxu0 %v820_v20 }
  0x19   :  { %822 = vmatprep.subr.bf16.mxu0 %v862_v0 }
  0x1c   :  { %824 = vmatpush3.bf16.msra.mxu0 %v823_v23 }
  0x1d   :  { %825 = vmatprep.subr.bf16.mxu0 %v862_v0 }
  0x20   :  { %827 = vmatpush3.bf16.msra.mxu0 %v826_v26 }
  0x23   :  { %766 = vmatmul.mubr.f32.vlgmr.msra.gmra.mrb[0].mxu0 %v29_v27  ;;  %v490_v27 = vld [vmem:[%s1053_s5] sm:$0x1] }
  0xf6   :  { %v115_v28 = vpop.f32.mrb[0].mxu0 }
  0xf7   :  { %198 = vperm.xlu0 %842, %v115_v28   ;;  %v767_v29 = vpop.f32.mrb[1].mxu0  ;;  %769 = vmatpush3.xpose.msk.msra.mxu1 %vm120_vm1, %v115_v28 }
  0xf8   :  { %773 = vmatprep.subr.mxu1 %v864_v4 }
  0xfa   :  { %771 = vmatmul.mubr.msk.f32.vlgmr.msra.gmra.mrb[0].mxu1 %vm120_vm1, %v119_v30 }
  0xfb   :  { %843 = vset.pattern.permute.xlu0 %v866_v31  ;;  %774 = vmatpush3.msra.mxu1 %v115_v28 }
  0xfc   :  { %303 = vperm.xlu0 %843, %v115_v28   ;;  %775 = vmatprep.mubr.msk.f32.mxu1 %vm863_vm0, %v864_v4 }
  0xfd   :  { %778 = vmatprep.subr.mxu1 %v864_v4 }
 0x100   :  { %845 = vset.pattern.permute.xlu0 %v868_v19 }
 0x176   :  { %v199_v34 = vpop.permute.xlu0 %198 }
 0x17b   :  { %v304_v42 = vpop.permute.xlu0 %303 }
 0x1cd   :  { %v193_v37 = vpop.f32.mrb[0].mxu1 }
 0x1ce   :  { %v204_v38 = vrot.slane %v193_v37, %v203_v35  ;;  %v309_v39 = vrot.slane %v193_v37, %v308_v36  ;;  %v772_v40 = vpop.f32.mrb[1].mxu1 }
 0x1d0   :  { %v205_v43 = vadd.f32 %v204_v38, %v199_v34  ;;  %v310_v44 = vadd.f32 %v309_v39, %v304_v42 }
 0x1d2   :  { %vm206_vm2 = vcmp.gt.f32.partialorder %v205_v43, 0.0  ;;  %v207_v46 = vmul.f32 0.2, %v205_v43  ;;  %vm311_vm3 = vcmp.gt.f32.partialorder %v310_v44, 0.0  ;;  %v312_v47 = vmul.f32 0.2, %v310_v44 }
 0x1d4   :  { %v208_v48 = vsel %vm206_vm2, %v205_v43, %v207_v46  ;;  %v313_v49 = vsel %vm311_vm3, %v310_v44, %v312_v47 }
 0x1d5   :  { %v209_v50 = vadd.f32 %v208_v48, %v995_v45  ;;  %v314_v52 = vadd.f32 %v313_v49, %v995_v45 }
 0x1d7   :  { %v211_v51 = vsel %vm210_vm4, %v209_v50, -inf  ;;  %v315_v53 = vsel %vm210_vm4, %v314_v52, -inf }
 0x1d8   :  { %212 = vmax.xlane.f32.xlu1 %v211_v51 }
 0x1dc   :  { %316 = vmax.xlane.f32.xlu1 %v315_v53 }
 0x265   :  { %v213_v54 = vpop.xlane.xlu1 %212 }
 0x266   :  { %v214_v55 = vsub.f32 %v209_v50, %v213_v54 }
 0x268   :  { %v215_v56 = vmul.f32 1.442695, %v214_v55 }
 0x269   :  { %v317_v57 = vpop.xlane.xlu1 %316 }
 0x26a   :  { %846 = vpow2.f32 %v215_v56  ;;  %v318_v58 = vsub.f32 %v314_v52, %v317_v57 }
 0x26c   :  { %v319_v59 = vmul.f32 1.442695, %v318_v58 }
 0x26e   :  { %848 = vpow2.f32 %v319_v59 }
 0x274   :  { %v847_v60 = vpop.eup %846 }
 0x275   :  { %v217_v61 = vsel %vm210_vm4, %v847_v60, 0.0 }
 0x276   :  { %218 = vadd.xlane.f32.xlu1 %v217_v61 }
 0x278   :  { %v849_v62 = vpop.eup %848 }
 0x279   :  { %v321_v63 = vsel %vm210_vm4, %v849_v62, 0.0 }
 0x27a   :  { %322 = vadd.xlane.f32.xlu0 %v321_v63 }
 0x287   :  { %326 = vrot.lane.b32.xlu1 %v115_v28, %s867_s2 }
 0x28b   :  { %329 = vrot.lane.b32.xlu1 %v693_v1, %s867_s2 }
 0x303   :  { %v219_v2 = vpop.xlane.xlu1 %218 }
 0x304   :  { %850 = vrcp.f32 %v219_v2 }
 0x307   :  { %v323_v3 = vpop.xlane.xlu0 %322  ;;  %v327_v7 = vpop.permute.xlu1 %326 }
 0x308   :  { %852 = vrcp.f32 %v323_v3 }
 0x30b   :  { %v330_v18 = vpop.permute.xlu1 %329 }
 0x30e   :  { %v851_v5 = vpop.eup %850 }
 0x30f   :  { %v221_v6 = vmul.f32 %v851_v5, %v847_v60 }
 0x311   :  { %776 = vmatmul.mubr.msk.f32.vlgmr.msra.gmra.mrb[2].mxu1 %vm210_vm4, %v221_v6 }
 0x312   :  { %v853_v8 = vpop.eup %852  ;;  %779 = vmatpush3.msra.mxu1 %v327_v7  ;;  %780 = vmatprep.mubr.msk.f32.mxu1 %vm863_vm0, %v864_v4 }
 0x313   :  { %v325_v9 = vmul.f32 %v853_v8, %v849_v62  ;;  %828 = vmatprep.subr.bf16.mxu1 %v862_v0 }
 0x315   :  { %781 = vmatmul.mubr.msk.f32.vlgmr.msra.gmra.mrb[4].mxu1 %vm210_vm4, %v325_v9 }
 0x316   :  { %791 = vmatprep.mubr.msk.f32.mxu1 %vm863_vm0, %v864_v4  ;;  %830 = vmatpush3.bf16.msra.mxu1 %v829_v13 }
 0x317   :  { %831 = vmatprep.subr.bf16.mxu1 %v862_v0 }
 0x31a   :  { %833 = vmatpush3.bf16.msra.mxu1 %v832_v15 }
 0x31b   :  { %794 = vmatprep.subr.mxu1 %v864_v4 }
 0x3e4   :  { %v297_v16 = vpop.f32.mrb[2].mxu1 }
 0x3e5   :  { %v777_v17 = vpop.f32.mrb[3].mxu1  ;;  %v298_v24 = vadd.f32 %v693_v1, %v297_v16 }
 0x3e7   :  { %v301_v25 = vmax.f32 %v298_v24, 0.0 }
 0x3e8   :  { %v401_v20 = vpop.f32.mrb[4].mxu1 }
 0x3e9   :  { %v402_v21 = vadd.f32 %v401_v20, %v330_v18  ;;  %v782_v22 = vpop.f32.mrb[5].mxu1 }
 0x3eb   :  { %v405_v23 = vmax.f32 %v402_v21, 0.0 }
 0x3ed   :  { %407 = vrot.lane.b32.xlu1 %v405_v23, %s869_s27 }
 0x45f   :  { %v408_v0 = vpop.permute.xlu1 %407 }
 0x460   :  { %v411_v26 = vsel %vm410_vm5, %v301_v25, %v408_v0 }
 0x461   :  { %792 = vmatmul.mubr.msk.f32.vlgmr.msra.gmra.mrb[6].mxu1 %vm416_vm6, %v411_v26 }
 0x462   :  { %795 = vmatpush3.xpose.msk.msra.mxu1 %vm416_vm6, %v411_v26  ;;  %796 = vmatprep.mubr.msk.f32.mxu1 %vm863_vm0, %v864_v4 }
 0x463   :  { %799 = vmatprep.subr.mxu1 %v864_v4 }
 0x465   :  { %797 = vmatmul.mubr.msk.f32.vlgmr.msra.gmra.mrb[8].mxu1 %vm416_vm6, %v490_v27 }
 0x466   :  { %801 = vmatprep.mubr.msk.f32.mxu1 %vm863_vm0, %v864_v4 }
 0x534   :  { %v486_v28 = vpop.f32.mrb[6].mxu1 }
 0x535   :  { %566 = vperm.xlu1 %844, %v486_v28   ;;  %v793_v29 = vpop.f32.mrb[7].mxu1  ;;  %800 = vmatpush3.msra.mxu1 %v486_v28 }
 0x538   :  { %v560_v30 = vpop.f32.mrb[8].mxu1 }
 0x539   :  { %v798_v31 = vpop.f32.mrb[9].mxu1  ;;  %v572_v32 = vrot.slane %v560_v30, %v203_v35 }
 0x5b4   :  { %v567_v34 = vpop.permute.xlu1 %566 }
 0x5b5   :  { %v573_v36 = vadd.f32 %v572_v32, %v567_v34 }
 0x5b7   :  { %vm574_vm7 = vcmp.gt.f32.partialorder %v573_v36, 0.0  ;;  %v575_v37 = vmul.f32 0.2, %v573_v36 }
 0x5b9   :  { %v576_v38 = vsel %vm574_vm7, %v573_v36, %v575_v37 }
 0x5ba   :  { %v577_v39 = vadd.f32 %v576_v38, %v995_v45  ;;  %v699_v45 = vld [vmem:[%s1054_s6] ss:$0 sm:$0xff] }
 0x5bc   :  { %v578_v40 = vsel %vm210_vm4, %v577_v39, -inf }
 0x5bd   :  { %579 = vmax.xlane.f32.xlu1 %v578_v40 }
 0x64a   :  { %v580_v4 = vpop.xlane.xlu1 %579 }
 0x64b   :  { %v581_v41 = vsub.f32 %v577_v39, %v580_v4 }
 0x64d   :  { %v582_v42 = vmul.f32 1.442695, %v581_v41 }
 0x64f   :  { %854 = vpow2.f32 %v582_v42 }
 0x659   :  { %v855_v43 = vpop.eup %854 }
 0x65a   :  { %v584_v44 = vsel %vm210_vm4, %v855_v43, 0.0 }
 0x65b   :  { %585 = vadd.xlane.f32.xlu0 %v584_v44 }
 0x6e8   :  { %v586_v33 = vpop.xlane.xlu0 %585 }
 0x6e9   :  { %856 = vrcp.f32 %v586_v33 }
 0x6f3   :  { %v857_v35 = vpop.eup %856 }
 0x6f4   :  { %v588_v46 = vmul.f32 %v857_v35, %v855_v43 }
 0x6f6   :  { %802 = vmatmul.mubr.msk.f32.vlgmr.msra.gmra.mrb[10].mxu1 %vm210_vm4, %v588_v46 }
 0x7c9   :  { %v665_v47 = vpop.f32.mrb[10].mxu1 }
 0x7ca   :  { %v666_v48 = vadd.f32 %v699_v45, %v665_v47  ;;  %v803_v49 = vpop.f32.mrb[11].mxu1 }
 0x7cc   :  { %v669_v50 = vrot.slane %v666_v48, 4 }
 0x7ce   :  { %v670_v51 = vmax.f32 %v666_v48, %v669_v50 }
 0x7d0   :  { %v671_v52 = vrot.slane %v670_v51, 2 }
 0x7d2   :  { %v672_v53 = vmax.f32 %v670_v51, %v671_v52 }
 0x7d4   :  { %v673_v54 = vrot.slane %v672_v53, 1 }
 0x7d6   :  { %v674_v55 = vmax.f32 %v672_v53, %v673_v54 }
 0x7d8   :  { %v675_v56 = vsub.f32 %v666_v48, %v674_v55 }
 0x7da   :  { %v676_v57 = vmul.f32 1.442695, %v675_v56 }
 0x7dc   :  { %858 = vpow2.f32 %v676_v57 }
 0x7e6   :  { %v859_v58 = vpop.eup %858 }
 0x7e7   :  { %v678_v59 = vrot.slane %v859_v58, 4 }
 0x7e9   :  { %v679_v60 = vadd.f32 %v859_v58, %v678_v59 }
 0x7eb   :  { %v680_v61 = vrot.slane %v679_v60, 2 }
 0x7ed   :  { %v681_v62 = vadd.f32 %v680_v61, %v679_v60 }
 0x7ef   :  { %v682_v63 = vrot.slane %v681_v62, 1 }
 0x7f1   :  { %v683_v1 = vadd.f32 %v682_v63, %v681_v62 }
 0x7f3   :  { %860 = vrcp.f32 %v683_v1 }
 0x7fd   :  { %v861_v2 = vpop.eup %860 }
 0x7fe   :  { %v685_v3 = vmul.f32 %v861_v2, %v859_v58 }
 0x800   :  { %686 = vst [vmem:[%s1055_s8] sm:$0xff] %v685_v3 }

</bundles_post_ra>
